<compile_context>
chip_gen: v7x
topology: tpu7x:2x2x1
jax: 0.10.0
libtpu: 0.0.40
codegen_flags: <defaults>
</compile_context>

<pallas_src>
import functools

import jax
import jax.numpy as jnp
from jax import lax
from jax.experimental import pallas as pl
from jax.experimental.pallas import tpu as pltpu

LANE = 128


def _round_up(x, m):
    return (x + m - 1) // m * m


def _vmem_budget_bytes():
    """Generation-aware VMEM budget: ~3/4 of physical capacity.
    -> ~96 MiB on v5e/v6e (128 MiB VMEM), ~48 MiB on v7x (64 MiB VMEM)."""
    cap = None
    try:
        cap = getattr(pltpu.get_tpu_info(), "vmem_capacity_bytes", None)
    except Exception:
        cap = None
    if not cap:
        cap = 64 * 1024 * 1024          # conservative fallback (v7x floor)
    return int(cap) * 3 // 4


# ----------------------------- Pallas kernels ------------------------------

def _conv_relu_gap_kernel(p_ref, w_ref, b_ref, o_ref, *, tile_s, s_total):
    """Fused conv-stem matmul + bias + ReLU + partial global-average-pool sum.

    p_ref: (1, tile_s, K)        bf16 im2col patches (K = C*kh*kw, unpadded)
    w_ref: (K, Cout_pad)         bf16 conv weights
    b_ref: (1, Cout_pad)         f32 conv bias
    o_ref: (1, 1, 1, Cout_pad)   f32 partial GAP sum for one (batch, spatial
                                 split) pair; accumulated over the
                                 "arbitrary" ki grid axis, scaled outside.
    """
    ki = pl.program_id(2)

    @pl.when(ki == 0)
    def _():
        o_ref[...] = jnp.zeros_like(o_ref)

    y = jnp.dot(p_ref[0], w_ref[...], preferred_element_type=jnp.float32)
    y = jnp.maximum(y + b_ref[...], 0.0)                     # bias + ReLU in f32

    # cdiv-style grid: mask spatial rows beyond the true Ho*Wo extent so the
    # zero-padded tail never contributes (its ReLU(bias) would be nonzero).
    blk = pl.program_id(1) * pl.num_programs(2) + ki
    rows = blk * tile_s + lax.broadcasted_iota(jnp.int32, (tile_s, 1), 0)
    y = jnp.where(rows < s_total, y, 0.0)

    o_ref[0, 0] = o_ref[0, 0] + jnp.sum(y, axis=0, keepdims=True)


def _linear_bn_kernel(x_ref, w_ref, g_ref, beta_ref, o_ref):
    """Fused bias-free Linear + BatchNorm1d (training-mode batch statistics).

    x_ref: (B, Fin_pad) bf16; w_ref: (Fin_pad, Fout_pad) bf16;
    g/beta: (1, Fout_pad) f32; o_ref: (B, Fout_pad) f32.

    The Linear bias is omitted: under training-mode BatchNorm1d it cancels
    exactly against the batch mean.  momentum=0.01 only affects the running
    statistics buffers, not the forward output in training mode.
    """
    y = jnp.dot(x_ref[...], w_ref[...], preferred_element_type=jnp.float32)
    mean = jnp.mean(y, axis=0, keepdims=True)
    var = jnp.mean(jnp.square(y - mean), axis=0, keepdims=True)   # biased var
    inv = lax.rsqrt(var + 1e-5)
    o_ref[...] = (y - mean) * inv * g_ref[...] + beta_ref[...]


# ------------------------------- wrappers -----------------------------------

def _derive_spatial_tile(s_chunk, K, Cout, budget_bytes):
    """Largest MXU-friendly spatial tile fitting the VMEM budget.

    Per grid step: double-buffered bf16 patch tile (scales with rows) plus
    conv weights (bf16, grid-invariant but conservatively counted as
    double-buffered), f32 bias and the f32 output accumulator block (fixed).
    """
    fixed = 2 * K * Cout * 2 + 2 * Cout * 4 + 2 * Cout * 4
    per_row = 2 * K * 2
    max_rows = max((budget_bytes - fixed) // per_row, 16)
    if s_chunk <= max_rows:
        return _round_up(s_chunk, 16)          # whole chunk in one grid step
    # Prefer MXU-aligned M: 256 feeds the 2x256^2 MXU on v6e/v7x (and is a
    # multiple of the v5e 128-wide MXU); fall back to 128, then sublane 16.
    for align in (256, 128, 16):
        t = (max_rows // align) * align
        if t >= align:
            return t
    return 16


def conv_relu_gap(patches, w, b, *, tile_s, n_k, splits, s_total, vmem_limit):
    """patches: (B, S_pad, K) bf16 -> (B, splits, 1, Cout_pad) f32 partial sums."""
    B, _, K = patches.shape
    Cout = w.shape[1]
    # TODO(synk): the grid-invariant w/b blocks could be single-buffered via
    # pipeline_mode=pl.Buffered(1); negligible at this stem size.
    return pl.pallas_call(
        functools.partial(_conv_relu_gap_kernel, tile_s=tile_s, s_total=s_total),
        out_shape=jax.ShapeDtypeStruct((B, splits, 1, Cout), jnp.float32),
        grid=(B, splits, n_k),
        in_specs=[
            pl.BlockSpec((1, tile_s, K), lambda bi, p, ki: (bi, p * n_k + ki, 0)),
            pl.BlockSpec((K, Cout), lambda bi, p, ki: (0, 0)),
            pl.BlockSpec((1, Cout), lambda bi, p, ki: (0, 0)),
        ],
        out_specs=pl.BlockSpec((1, 1, 1, Cout), lambda bi, p, ki: (bi, p, 0, 0)),
        compiler_params=pltpu.CompilerParams(
            dimension_semantics=("parallel", "parallel", "arbitrary"),
            vmem_limit_bytes=vmem_limit),
    )(patches, w, b)


def linear_bn(x, w, gamma, beta):
    # TODO(synk): for large batch, tile B as a "parallel" grid axis and
    # accumulate per-feature sum / sum-of-squares in VMEM scratch before
    # normalizing; at tiny B this single-block kernel is launch-overhead
    # dominated and full residency is far below any VMEM limit.
    B, Fin = x.shape
    Fout = w.shape[1]
    return pl.pallas_call(
        _linear_bn_kernel,
        out_shape=jax.ShapeDtypeStruct((B, Fout), jnp.float32),
        grid=(1,),
        in_specs=[
            pl.BlockSpec((B, Fin), lambda i: (0, 0)),
            pl.BlockSpec((Fin, Fout), lambda i: (0, 0)),
            pl.BlockSpec((1, Fout), lambda i: (0, 0)),
            pl.BlockSpec((1, Fout), lambda i: (0, 0)),
        ],
        out_specs=pl.BlockSpec((B, Fout), lambda i: (0, 0)),
        compiler_params=pltpu.CompilerParams(
            dimension_semantics=("arbitrary",)),
    )(x, w, gamma, beta)


# ------------------------------ JAX glue -------------------------------------

def im2col(x, kh, kw, stride, pad):
    """NCHW -> (B, Ho*Wo, C*kh*kw) patches, column order c*(kh*kw) + i*kw + j."""
    B, C, H, W = x.shape
    xp = jnp.pad(x, ((0, 0), (0, 0), (pad, pad), (pad, pad)))
    Ho = (H + 2 * pad - kh) // stride + 1
    Wo = (W + 2 * pad - kw) // stride + 1
    cols = []
    for i in range(kh):
        for j in range(kw):
            cols.append(xp[:, :, i:i + stride * Ho:stride,
                               j:j + stride * Wo:stride])      # (B, C, Ho, Wo)
    cols = jnp.stack(cols, axis=0)                              # (kh*kw, B, C, Ho, Wo)
    cols = cols.transpose(1, 3, 4, 2, 0)                        # (B, Ho, Wo, C, kh*kw)
    return cols.reshape(B, Ho * Wo, C * kh * kw), Ho, Wo


def init_params(key, in_ch, stem_ch, feature_size):
    k1, k2, k3, k4 = jax.random.split(key, 4)
    return {
        # stand-in trunk stem (7x7, stride 2, pad 3), PyTorch OIHW layout
        "conv_w": 0.1 * jax.random.normal(k1, (stem_ch, in_ch, 7, 7), jnp.float32),
        "conv_b": 0.1 * jax.random.normal(k2, (stem_ch,), jnp.float32),
        # nn.Linear(resnet.fc.in_features, feature_size): weight is (out, in)
        "lin_w": 0.1 * jax.random.normal(k3, (feature_size, stem_ch), jnp.float32),
        "lin_b": 0.1 * jax.random.normal(k4, (feature_size,), jnp.float32),
        # nn.BatchNorm1d(feature_size) affine params
        "gamma": jnp.ones((feature_size,), jnp.float32),
        "beta": jnp.zeros((feature_size,), jnp.float32),
    }


def encoder_cnn_forward(params, images, *, spatial_splits=2):
    stem_ch = params["conv_w"].shape[0]
    feature_size = params["lin_w"].shape[0]
    budget = _vmem_budget_bytes()

    # --- trunk stand-in: conv stem + bias + ReLU + global avg pool (ONE kernel) ---
    # Cast to bf16 BEFORE im2col so the XLA-materialized patch stream (the
    # dominant HBM traffic of this memory-bound stage) is half-width, and keep
    # K = C*49 unpadded in HBM; VMEM layout absorbs the lane pad.
    patches, Ho, Wo = im2col(images.astype(jnp.bfloat16), 7, 7, stride=2, pad=3)
    B, S, K = patches.shape
    Cout_pad = _round_up(stem_ch, LANE)

    P = max(int(spatial_splits), 1)        # 2 keeps both v7x TCs busy at small B
    s_chunk = pl.cdiv(S, P)
    tile_s = _derive_spatial_tile(s_chunk, K, Cout_pad, budget)
    n_k = pl.cdiv(s_chunk, tile_s)
    S_pad = P * n_k * tile_s
    if S_pad > S:
        patches = jnp.pad(patches, ((0, 0), (0, S_pad - S), (0, 0)))

    wc = params["conv_w"].reshape(stem_ch, K).T                 # (K, Cout)
    wc = jnp.pad(wc, ((0, 0), (0, Cout_pad - stem_ch))).astype(jnp.bfloat16)
    bc = jnp.pad(params["conv_b"], (0, Cout_pad - stem_ch)).reshape(1, -1)

    partial = conv_relu_gap(patches, wc, bc, tile_s=tile_s, n_k=n_k,
                            splits=P, s_total=S, vmem_limit=budget)
    feats = jnp.sum(partial[:, :, 0, :], axis=1) * (1.0 / S)    # (B, Cout_pad) f32
    # features.reshape(B, -1) of (B, Cout, 1, 1) == (B, Cout); the zero-padded
    # channels stay exactly zero through the linear below.

    # --- head: Linear -> BatchNorm1d (training-mode batch stats), one kernel ---
    Fout_pad = _round_up(feature_size, LANE)
    wl = params["lin_w"].T                                      # (Cout, F)
    wl = jnp.pad(wl, ((0, Cout_pad - stem_ch),
                      (0, Fout_pad - feature_size))).astype(jnp.bfloat16)
    g = jnp.pad(params["gamma"], (0, Fout_pad - feature_size)).reshape(1, -1)
    bt = jnp.pad(params["beta"], (0, Fout_pad - feature_size)).reshape(1, -1)
    # NOTE: params["lin_b"] is intentionally unused here -- under training-mode
    # BatchNorm the Linear bias cancels exactly against the batch mean.

    out = linear_bn(feats.astype(jnp.bfloat16), wl, g, bt)      # (B, Fout_pad)
    return out[:, :feature_size]


if __name__ == "__main__":
    B, C, H, W = 2, 4, 16, 16          # small NCHW images
    STEM_CH = 64                        # stand-in for resnet.fc.in_features
    FEATURE_SIZE = 32

    key = jax.random.PRNGKey(0)
    k_img, k_par = jax.random.split(key)
    images = jax.random.normal(k_img, (B, C, H, W), jnp.float32)
    params = init_params(k_par, C, STEM_CH, FEATURE_SIZE)

    out = jax.jit(encoder_cnn_forward)(params, images)
    jax.block_until_ready(out)
    assert out.shape == (B, FEATURE_SIZE) and out.dtype == jnp.float32
    print("KERNEL_OK")
</pallas_src>

<mosaic_0001>
module attributes {stable_mosaic.version = 11 : i64} {
  func.func @_conv_relu_gap_kernel(%arg0: i32, %arg1: i32, %arg2: i32, %arg3: memref<1x32x196xbf16, #tpu.memory_space<vmem>>, %arg4: memref<196x128xbf16, #tpu.memory_space<vmem>>, %arg5: memref<1x128xf32, #tpu.memory_space<vmem>>, %arg6: memref<1x1x1x128xf32, #tpu.memory_space<vmem>>) attributes {dimension_semantics = [#tpu.dimension_semantics<parallel>, #tpu.dimension_semantics<parallel>, #tpu.dimension_semantics<arbitrary>], iteration_bounds = array<i64: 2, 2, 1>, scalar_prefetch = 0 : i64, scratch_operands = 0 : i64, tpu.core_type = #tpu.core_type<tc>, window_params = [{transform_indices = @transform_0, window_bounds = array<i64: 1, 32, 196>}, {pipeline_mode = #tpu.pipeline_mode<synchronous>, transform_indices = @transform_1, window_bounds = array<i64: 196, 128>}, {pipeline_mode = #tpu.pipeline_mode<synchronous>, transform_indices = @transform_2, window_bounds = array<i64: 1, 128>}, {transform_indices = @transform_3, window_bounds = array<i64: 1, 1, 1, 128>}]} {
    %c0_i32 = arith.constant 0 : i32
    %0 = arith.cmpi eq, %arg2, %c0_i32 : i32
    %1 = arith.extui %0 : i1 to i32
    %c0_i32_0 = arith.constant 0 : i32
    %2 = arith.cmpi ne, %1, %c0_i32_0 : i32
    scf.if %2 {
      %cst_18 = arith.constant 0.000000e+00 : f32
      %32 = vector.broadcast %cst_18 : f32 to vector<1x1x1x128xf32>
      %c0_19 = arith.constant 0 : index
      %c0_20 = arith.constant 0 : index
      %c0_21 = arith.constant 0 : index
      %c0_22 = arith.constant 0 : index
      %33 = vector.load %arg6[%c0_19, %c0_20, %c0_21, %c0_22] : memref<1x1x1x128xf32, #tpu.memory_space<vmem>>, vector<1x1x1x128xf32>
      tpu.vector_store %arg6[%c0_19, %c0_20, %c0_21, %c0_22], %32 {strides = array<i32>} : memref<1x1x1x128xf32, #tpu.memory_space<vmem>>, vector<1x1x1x128xf32>,
    } else {
    }
    %c0 = arith.constant 0 : index
    %c0_1 = arith.constant 0 : index
    %c0_2 = arith.constant 0 : index
    %3 = vector.load %arg3[%c0, %c0_1, %c0_2] : memref<1x32x196xbf16, #tpu.memory_space<vmem>>, vector<1x32x196xbf16>
    %4 = vector.shape_cast %3 : vector<1x32x196xbf16> to vector<32x196xbf16>
    %c0_3 = arith.constant 0 : index
    %c0_4 = arith.constant 0 : index
    %5 = vector.load %arg4[%c0_3, %c0_4] : memref<196x128xbf16, #tpu.memory_space<vmem>>, vector<196x128xbf16>
    %cst = arith.constant dense<0.000000e+00> : vector<32x128xf32>
    %6 = tpu.matmul %4, %5, %cst {dimension_numbers = #tpu.dot_dimension_numbers<[1], [0], [0], [1], [0, 0, 1, 1], [], []>} : vector<32x196xbf16>, vector<196x128xbf16>, vector<32x128xf32> -> vector<32x128xf32>
    %c0_5 = arith.constant 0 : index
    %c0_6 = arith.constant 0 : index
    %7 = vector.load %arg5[%c0_5, %c0_6] : memref<1x128xf32, #tpu.memory_space<vmem>>, vector<1x128xf32>
    %8 = vector.broadcast %7 : vector<1x128xf32> to vector<32x128xf32>
    %9 = arith.addf %6, %8 : vector<32x128xf32>
    %cst_7 = arith.constant 0.000000e+00 : f32
    %10 = vector.broadcast %cst_7 : f32 to vector<32x128xf32>
    %11 = arith.maximumf %9, %10 : vector<32x128xf32>
    %c1_i32 = arith.constant 1 : i32
    %12 = arith.muli %arg1, %c1_i32 : i32
    %13 = arith.addi %12, %arg2 : i32
    %c32_i32 = arith.constant 32 : i32
    %14 = arith.muli %13, %c32_i32 : i32
    %15 = tpu.iota {dimensions = array<i32: 0>} : vector<32x1xi32>
    %16 = vector.broadcast %14 : i32 to vector<32x1xi32>
    %17 = arith.addi %16, %15 : vector<32x1xi32>
    %c64_i32 = arith.constant 64 : i32
    %18 = vector.broadcast %c64_i32 : i32 to vector<32x1xi32>
    %19 = arith.cmpi slt, %17, %18 : vector<32x1xi32>
    %cst_8 = arith.constant 0.000000e+00 : f32
    %20 = vector.shape_cast %19 : vector<32x1xi1> to vector<32x1xi1>
    %21 = vector.broadcast %20 : vector<32x1xi1> to vector<32x128xi1>
    %22 = vector.broadcast %cst_8 : f32 to vector<32x128xf32>
    %23 = arith.select %21, %11, %22 : vector<32x128xi1>, vector<32x128xf32>
    %c0_9 = arith.constant 0 : index
    %c0_10 = arith.constant 0 : index
    %c0_11 = arith.constant 0 : index
    %c0_12 = arith.constant 0 : index
    %24 = vector.load %arg6[%c0_9, %c0_10, %c0_11, %c0_12] : memref<1x1x1x128xf32, #tpu.memory_space<vmem>>, vector<1x1x1x128xf32>
    %25 = vector.shape_cast %24 : vector<1x1x1x128xf32> to vector<1x128xf32>
    %cst_13 = arith.constant dense<0.000000e+00> : vector<128xf32>
    %26 = vector.multi_reduction <add>, %23, %cst_13 [0] : vector<32x128xf32> to vector<128xf32>
    %27 = vector.shape_cast %26 : vector<128xf32> to vector<1x128xf32>
    %28 = arith.addf %25, %27 : vector<1x128xf32>
    %c0_14 = arith.constant 0 : index
    %c0_15 = arith.constant 0 : index
    %c0_16 = arith.constant 0 : index
    %c0_17 = arith.constant 0 : index
    %29 = vector.load %arg6[%c0_14, %c0_15, %c0_16, %c0_17] : memref<1x1x1x128xf32, #tpu.memory_space<vmem>>, vector<1x1x1x128xf32>
    %30 = vector.shape_cast %29 : vector<1x1x1x128xf32> to vector<1x128xf32>
    %31 = vector.shape_cast %28 : vector<1x128xf32> to vector<1x1x1x128xf32>
    tpu.vector_store %arg6[%c0_14, %c0_15, %c0_16, %c0_17], %31 {strides = array<i32>} : memref<1x1x1x128xf32, #tpu.memory_space<vmem>>, vector<1x1x1x128xf32>,
    return
  }
  func.func @transform_0(%arg0: i32, %arg1: i32, %arg2: i32) -> (i32, i32, i32) {
    %c1_i32 = arith.constant 1 : i32
    %0 = arith.muli %arg1, %c1_i32 : i32
    %1 = arith.addi %0, %arg2 : i32
    %c0_i32 = arith.constant 0 : i32
    %c0_i32_0 = arith.constant 0 : i32
    return %arg0, %1, %c0_i32 : i32, i32, i32
  }
  func.func @transform_1(%arg0: i32, %arg1: i32, %arg2: i32) -> (i32, i32) {
    %c0_i32 = arith.constant 0 : i32
    %c0_i32_0 = arith.constant 0 : i32
    %c0_i32_1 = arith.constant 0 : i32
    return %c0_i32, %c0_i32_0 : i32, i32
  }
  func.func @transform_2(%arg0: i32, %arg1: i32, %arg2: i32) -> (i32, i32) {
    %c0_i32 = arith.constant 0 : i32
    %c0_i32_0 = arith.constant 0 : i32
    %c0_i32_1 = arith.constant 0 : i32
    return %c0_i32, %c0_i32_0 : i32, i32
  }
  func.func @transform_3(%arg0: i32, %arg1: i32, %arg2: i32) -> (i32, i32, i32, i32) {
    %c0_i32 = arith.constant 0 : i32
    %c0_i32_0 = arith.constant 0 : i32
    %c0_i32_1 = arith.constant 0 : i32
    return %arg0, %arg1, %c0_i32, %c0_i32_0 : i32, i32, i32, i32
  }
}

module attributes {stable_mosaic.version = 11 : i64} {
  func.func @_linear_bn_kernel(%arg0: i32, %arg1: memref<2x128xbf16, #tpu.memory_space<vmem>>, %arg2: memref<128x128xbf16, #tpu.memory_space<vmem>>, %arg3: memref<1x128xf32, #tpu.memory_space<vmem>>, %arg4: memref<1x128xf32, #tpu.memory_space<vmem>>, %arg5: memref<2x128xf32, #tpu.memory_space<vmem>>) attributes {dimension_semantics = [#tpu.dimension_semantics<arbitrary>], iteration_bounds = array<i64: 1>, scalar_prefetch = 0 : i64, scratch_operands = 0 : i64, tpu.core_type = #tpu.core_type<tc>, window_params = [{pipeline_mode = #tpu.pipeline_mode<synchronous>, transform_indices = @transform_0, window_bounds = array<i64: 2, 128>}, {pipeline_mode = #tpu.pipeline_mode<synchronous>, transform_indices = @transform_1, window_bounds = array<i64: 128, 128>}, {pipeline_mode = #tpu.pipeline_mode<synchronous>, transform_indices = @transform_2, window_bounds = array<i64: 1, 128>}, {pipeline_mode = #tpu.pipeline_mode<synchronous>, transform_indices = @transform_3, window_bounds = array<i64: 1, 128>}, {pipeline_mode = #tpu.pipeline_mode<synchronous>, transform_indices = @transform_4, window_bounds = array<i64: 2, 128>}]} {
    %c0 = arith.constant 0 : index
    %c0_0 = arith.constant 0 : index
    %0 = vector.load %arg1[%c0, %c0_0] : memref<2x128xbf16, #tpu.memory_space<vmem>>, vector<2x128xbf16>
    %c0_1 = arith.constant 0 : index
    %c0_2 = arith.constant 0 : index
    %1 = vector.load %arg2[%c0_1, %c0_2] : memref<128x128xbf16, #tpu.memory_space<vmem>>, vector<128x128xbf16>
    %cst = arith.constant dense<0.000000e+00> : vector<2x128xf32>
    %2 = tpu.matmul %0, %1, %cst {dimension_numbers = #tpu.dot_dimension_numbers<[1], [0], [0], [1], [0, 0, 1, 1], [], []>} : vector<2x128xbf16>, vector<128x128xbf16>, vector<2x128xf32> -> vector<2x128xf32>
    %cst_3 = arith.constant dense<0.000000e+00> : vector<128xf32>
    %3 = vector.multi_reduction <add>, %2, %cst_3 [0] : vector<2x128xf32> to vector<128xf32>
    %4 = vector.shape_cast %3 : vector<128xf32> to vector<1x128xf32>
    %cst_4 = arith.constant 2.000000e+00 : f32
    %5 = vector.broadcast %cst_4 : f32 to vector<1x128xf32>
    %6 = arith.divf %4, %5 : vector<1x128xf32>
    %7 = vector.broadcast %6 : vector<1x128xf32> to vector<2x128xf32>
    %8 = arith.subf %2, %7 : vector<2x128xf32>
    %9 = arith.mulf %8, %8 : vector<2x128xf32>
    %cst_5 = arith.constant dense<0.000000e+00> : vector<128xf32>
    %10 = vector.multi_reduction <add>, %9, %cst_5 [0] : vector<2x128xf32> to vector<128xf32>
    %11 = vector.shape_cast %10 : vector<128xf32> to vector<1x128xf32>
    %cst_6 = arith.constant 2.000000e+00 : f32
    %12 = vector.broadcast %cst_6 : f32 to vector<1x128xf32>
    %13 = arith.divf %11, %12 : vector<1x128xf32>
    %cst_7 = arith.constant 9.99999974E-6 : f32
    %14 = vector.broadcast %cst_7 : f32 to vector<1x128xf32>
    %15 = arith.addf %13, %14 : vector<1x128xf32>
    %16 = math.rsqrt %15 : vector<1x128xf32>
    %17 = vector.broadcast %6 : vector<1x128xf32> to vector<2x128xf32>
    %18 = arith.subf %2, %17 : vector<2x128xf32>
    %19 = vector.broadcast %16 : vector<1x128xf32> to vector<2x128xf32>
    %20 = arith.mulf %18, %19 : vector<2x128xf32>
    %c0_8 = arith.constant 0 : index
    %c0_9 = arith.constant 0 : index
    %21 = vector.load %arg3[%c0_8, %c0_9] : memref<1x128xf32, #tpu.memory_space<vmem>>, vector<1x128xf32>
    %22 = vector.broadcast %21 : vector<1x128xf32> to vector<2x128xf32>
    %23 = arith.mulf %20, %22 : vector<2x128xf32>
    %c0_10 = arith.constant 0 : index
    %c0_11 = arith.constant 0 : index
    %24 = vector.load %arg4[%c0_10, %c0_11] : memref<1x128xf32, #tpu.memory_space<vmem>>, vector<1x128xf32>
    %25 = vector.broadcast %24 : vector<1x128xf32> to vector<2x128xf32>
    %26 = arith.addf %23, %25 : vector<2x128xf32>
    %c0_12 = arith.constant 0 : index
    %c0_13 = arith.constant 0 : index
    %27 = vector.load %arg5[%c0_12, %c0_13] : memref<2x128xf32, #tpu.memory_space<vmem>>, vector<2x128xf32>
    tpu.vector_store %arg5[%c0_12, %c0_13], %26 {strides = array<i32>} : memref<2x128xf32, #tpu.memory_space<vmem>>, vector<2x128xf32>,
    return
  }
  func.func @transform_0(%arg0: i32) -> (i32, i32) {
    %c0_i32 = arith.constant 0 : i32
    %c0_i32_0 = arith.constant 0 : i32
    %c0_i32_1 = arith.constant 0 : i32
    return %c0_i32, %c0_i32_0 : i32, i32
  }
  func.func @transform_1(%arg0: i32) -> (i32, i32) {
    %c0_i32 = arith.constant 0 : i32
    %c0_i32_0 = arith.constant 0 : i32
    %c0_i32_1 = arith.constant 0 : i32
    return %c0_i32, %c0_i32_0 : i32, i32
  }
  func.func @transform_2(%arg0: i32) -> (i32, i32) {
    %c0_i32 = arith.constant 0 : i32
    %c0_i32_0 = arith.constant 0 : i32
    %c0_i32_1 = arith.constant 0 : i32
    return %c0_i32, %c0_i32_0 : i32, i32
  }
  func.func @transform_3(%arg0: i32) -> (i32, i32) {
    %c0_i32 = arith.constant 0 : i32
    %c0_i32_0 = arith.constant 0 : i32
    %c0_i32_1 = arith.constant 0 : i32
    return %c0_i32, %c0_i32_0 : i32, i32
  }
  func.func @transform_4(%arg0: i32) -> (i32, i32) {
    %c0_i32 = arith.constant 0 : i32
    %c0_i32_0 = arith.constant 0 : i32
    %c0_i32_1 = arith.constant 0 : i32
    return %c0_i32, %c0_i32_0 : i32, i32
  }
}

</mosaic_0001>

<bundles_post_ra>
// kernel: encoder_cnn_forward.3
= control target key start
LH: loop header
LB: loop body
LE: loop exit
PB: predicated region body
PF: predicated region fallthrough
CT: control target
= control target key end

     0   :  { %v254_v1 = vmov 0.0   ;;  %vm255_vm0 = vmmov 0   ;;  %s327_s0 = inlined_call_operand.vmem [shape: bf16[2,128], index: 0, kind: input, shape index: {}]   ;;  %s328_s1 = inlined_call_operand.vmem [shape: bf16[128,128], index: 1, kind: input, shape index: {}]   ;;  %s329_s2 = inlined_call_operand.vmem [shape: f32[1,128], index: 2, kind: input, shape index: {}]   ;;  %s330_s3 = inlined_call_operand.vmem [shape: f32[1,128], index: 3, kind: input, shape index: {}]   ;;  %s331_s4 = inlined_call_operand.hbm [shape: f32[2,128], index: 4, kind: output, shape index: {}]  }
   0x1   :  { %v220_v0 = vld [vmem:[%s328_s1] sm:$0xff]   ;;  %197 = vmatprep.subr.bf16.mxu0 %v254_v1  ;;  %v221_v2 = vld [vmem:[%s328_s1 + $0x8] sm:$0xff]   ;;  %213 = vmatprep.mubr.msk.bf16.mxu0 %vm255_vm0, %v254_v1  ;;  %v222_v3 = vld [vmem:[%s328_s1 + $0x10] sm:$0xff]  }
   0x2   :  { %198 = vmatpush3.bf16.msra.mxu0 %v220_v0 }
   0x3   :  { %199 = vmatprep.subr.bf16.mxu0 %v254_v1 }
   0x6   :  { %200 = vmatpush3.bf16.msra.mxu0 %v221_v2 }
   0x7   :  { %201 = vmatprep.subr.bf16.mxu0 %v254_v1 }
   0x8   :  { %9 = vsyncpa [#allocation3], 0  ;;  %v223_v4 = vld [vmem:[%s328_s1 + $0x18] sm:$0xff]   ;;  %v224_v5 = vld [vmem:[%s328_s1 + $0x20] sm:$0xff]   ;;  %vm124_vm1 = vcmask 1041408   ;;  %s256_s9 = smov [#allocation2]  }
   0x9   :  { %v225_v6 = vld [vmem:[%s328_s1 + $0x28] sm:$0xff]   ;;  %v226_v7 = vld [vmem:[%s328_s1 + $0x30] sm:$0xff]   ;;  %v227_v8 = vld [vmem:[%s328_s1 + $0x38] sm:$0xff]   ;;  %s170_s10 = sshll.u32 %s256_s9, 4  ;;  %s171_s10 = int_to_ptr.vmem [resolvable:$true] %s170_s10 }
   0xa   :  { %202 = vmatpush3.bf16.msra.mxu0 %v222_v3  ;;  %v19_v9 = vld [vmem:[%s327_s0] sm:$0x1]  ;;  %s230_s11 = scalar_lea.vmem %s171_s10, 32  ;;  %p235_p1 = scmp.lt.s32.totalorder %s171_s10, %s171_s10 }
   0xb   :  { %203 = vmatprep.subr.bf16.mxu0 %v254_v1  ;;  %v186_v34 = vld [vmem:[%s329_s2] ss:$0 sm:$0xff]  ;;  %p231_p0 = scmp.ne.s32.totalorder %s171_s10, %s230_s11  ;;  %p236_p2 = scmp.lt.s32.totalorder %s230_s11, %s230_s11 }
   0xc   :  { %v187_v36 = vld [vmem:[%s330_s3] ss:$0 sm:$0xff] }
   0xd   :  { %p237_p3 = por %p236_p2, %p235_p1 }
   0xe   :  { %204 = vmatpush3.bf16.msra.mxu0 %v223_v4 }
   0xf   :  { %205 = vmatprep.subr.bf16.mxu0 %v254_v1  ;;  %p238_p4 = pnand %p237_p3, %p231_p0 }
  0x12   :  { %206 = vmatpush3.bf16.msra.mxu0 %v224_v5 }
  0x13   :  { %207 = vmatprep.subr.bf16.mxu0 %v254_v1 }
  0x16   :  { %208 = vmatpush3.bf16.msra.mxu0 %v225_v6 }
  0x17   :  { %209 = vmatprep.subr.bf16.mxu0 %v254_v1 }
  0x1a   :  { %210 = vmatpush3.bf16.msra.mxu0 %v226_v7 }
  0x1b   :  { %211 = vmatprep.subr.bf16.mxu0 %v254_v1 }
  0x1e   :  { %212 = vmatpush3.bf16.msra.mxu0 %v227_v8 }
  0x21   :  { %214 = vmatmul.mubr.bf16.vlgmr.msra.gmra.mrb[0].mxu0 %v19_v9 }
  0xf4   :  { %v118_v10 = vpop.f32.mrb[0].mxu0 }
  0xf5   :  { %v125_v11 = vsel %vm124_vm1, %v118_v10, 0.0  ;;  %v215_v12 = vpop.f32.mrb[1].mxu0 }
  0xf6   :  { %v126_v13 = vrot.slane %v125_v11, 4  ;;  %v121_v14 = vpop.f32.mrb[2].mxu0 }
  0xf7   :  { %v216_v15 = vpop.f32.mrb[3].mxu0 }
  0xf8   :  { %v127_v16 = vadd.f32 %v126_v13, %v125_v11 }
  0xfa   :  { %v128_v17 = vrot.slane %v127_v16, 2 }
  0xfc   :  { %v129_v18 = vadd.f32 %v128_v17, %v127_v16 }
  0xfe   :  { %v130_v19 = vrot.slane %v129_v18, 1 }
 0x100   :  { %v131_v20 = vadd.f32 %v130_v19, %v129_v18 }
 0x102   :  { %v133_v21 = vmul.f32 0.5, %v131_v20 }
 0x104   :  { %v134_v22 = vsub.f32 %v118_v10, %v133_v21 }
 0x106   :  { %v135_v23 = vmul.f32 %v134_v22, %v134_v22 }
 0x108   :  { %v136_v24 = vsel %vm124_vm1, %v135_v23, 0.0 }
 0x109   :  { %v137_v25 = vrot.slane %v136_v24, 4 }
 0x10b   :  { %v138_v26 = vadd.f32 %v137_v25, %v136_v24 }
 0x10d   :  { %v139_v27 = vrot.slane %v138_v26, 2 }
 0x10f   :  { %v140_v28 = vadd.f32 %v139_v27, %v138_v26 }
 0x111   :  { %v141_v29 = vrot.slane %v140_v28, 1 }
 0x113   :  { %v142_v30 = vadd.f32 %v141_v29, %v140_v28 }
 0x115   :  { %v143_v31 = vmul.f32 0.5, %v142_v30 }
 0x117   :  { %v144_v32 = vadd.f32 1e-05, %v143_v31 }
 0x119   :  { %228 = vrsqrt.f32 %v144_v32 }
 0x123   :  { %v229_v33 = vpop.eup %228 }
 0x124   :  { %v146_v35 = vmul.f32 %v229_v33, %v134_v22 }
 0x126   :  { %v154_v37 = vmul.f32 %v186_v34, %v146_v35 }
 0x128   :  { %v162_v38 = vadd.f32 %v187_v36, %v154_v37 }
 0x12a   :  { %163 = vst [vmem:[#allocation2] sm:$0x3] %v162_v38 }
 0x12b   :  { %241 = shalt.err (!%p238_p4)
}
 0x12c   :  { %s242_s13 = scalar_lea.hbm %s331_s4, 32 }
 0x12d   :  { %p243_p5 = scmp.ne.s32.totalorder %s331_s4, %s242_s13  ;;  %p246_p6 = scmp.lt.u32.totalorder %s242_s13, %s331_s4 }
 0x12f   :  { %p248_p7 = pnand %p246_p6, %p243_p5 }
 0x131   :  { %251 = shalt.err (!%p248_p7)
}
 0x132   :  { %173 = dma.vmem_to_hbm [thread:$0]  %s171_s10, 32, %s331_s4, [#allocation3]  }
 0x133   :  { %252 = dma.done.wait [#allocation3], 32  }
 0x134   :  { %253 = vsyncadd [#allocation3], 4294967264 }
 0x135   :  { %177 = vsyncpa [#allocation3], 1 }

// kernel: encoder_cnn_forward.2
= control target key start
LH: loop header
LB: loop body
LE: loop exit
PB: predicated region body
PF: predicated region fallthrough
CT: control target
= control target key end

     0   :  { %s729_s12 = smov 0   ;;  %s731_s13 = smov 0   ;;  %s865_s0 = inlined_call_operand.vmem [shape: bf16[2,64,196], index: 0, kind: input, shape index: {}]   ;;  %s866_s1 = inlined_call_operand.vmem [shape: bf16[196,128], index: 1, kind: input, shape index: {}]   ;;  %s867_s2 = inlined_call_operand.vmem [shape: f32[1,128], index: 2, kind: input, shape index: {}]   ;;  %s868_s3 = inlined_call_operand.vmem [shape: f32[2,2,1,128], index: 3, kind: output, shape index: {}]  }
   0x1   :  { %s733_s14 = smov 0   ;;  %s735_s15 = smov 0  }
   0x2   :  { %s737_s16 = smov 0  }
   0x3 LB: > { %s28_s17 = sadd.s32 1, %s697_s14  ;;  %s32_s18 = sadd.s32 1, %s701_s15  ;;  %s705_s16 = sphi %s737_s16, %s13_s16   ;;  %s701_s15 = sphi %s735_s15, %s872_s15   ;;  %s697_s14 = sphi %s733_s14, %s871_s14   ;;  %s693_s13 = sphi %s731_s13, %s870_s13   ;;  %s689_s12 = sphi %s729_s12, %s869_s12  }
   0x4   : > { %p30_p0 = scmp.ge.s32.totalorder %s28_s17, 2  ;;  %p551_p1 = scmp.ge.s32.totalorder %s705_s16, 1 }
   0x5   : > { %p170_p2 = scmp.lt.s32.totalorder %s705_s16, 5 }
   0x6   : > { %s874_s17 = smov (%p30_p0, %s28_s17), 0  ;;  %s876_s18 = smov (!%p30_p0, %s32_s18), %s701_s15 }
   0x7   : > { %p171_p3 = pnand %p551_p1, %p170_p2  ;;  %p34_p4 = scmp.ge.s32.totalorder %s876_s18, 2 }
   0x8   : > { %v648_v0 = vld [vmem:[%s866_s1] sm:$0xff] (!%p171_p3)   ;;  %v707_v1 = vmov (!%p171_p3), 0   ;;  %v649_v2 = vld [vmem:[%s866_s1 + $0x8] sm:$0xff] (!%p171_p3)   ;;  %s552_s23 = sshll.u32 (!%p171_p3), %s689_s12, 2  ;;  %p204_p5 = scmp.lt.s32.totalorder (!%p171_p3), %s693_s13, 1  ;;  %v650_v3 = vld [vmem:[%s866_s1 + $0x10] sm:$0xff] (!%p171_p3)   ;;  %v423_v20 = vlaneseq (!%p171_p3) }
   0x9   : > { %s878_s18 = smov (%p34_p4, %s876_s18), 0  ;;  %174 = sbr.rel (%p171_p3) target bundleno = 302 (0x12e), region = 32 }
   0xa   : > { %368 = vmatprep.subr.bf16.mxu0 (!%p171_p3), %v707_v1  ;;  %580 = vmatprep.subr.bf16.mxu1 (!%p171_p3), %v707_v1  ;;  %p206_p6 = scmp.lt.s32.totalorder (!%p171_p3), %s552_s23, 7  ;;  %p217_p7 = scmp.lt.s32.totalorder (!%p171_p3), %s689_s12, 1  ;;  %v651_v4 = vld [vmem:[%s866_s1 + $0x18] sm:$0xff] (!%p171_p3)   ;;  %v652_v5 = vld [vmem:[%s866_s1 + $0x20] sm:$0xff] (!%p171_p3)   ;;  %vm357_vm0 = vcmask (!%p171_p3), 556032   ;;  %v708_v8 = vmov (!%p171_p3), 0.0  }
   0xb   : > { %369 = vmatpush1.bf16.msra.mxu0 (!%p171_p3), %v648_v0  ;;  %593 = vmatpush1.bf16.msra.mxu1 (!%p171_p3), %v648_v0  ;;  %v653_v9 = vld [vmem:[%s866_s1 + $0x28] sm:$0xff] (!%p171_p3)   ;;  %v654_v10 = vld [vmem:[%s866_s1 + $0x30] sm:$0xff] (!%p171_p3)   ;;  %v655_v11 = vld [vmem:[%s866_s1 + $0x38] sm:$0xff] (!%p171_p3)   ;;  %vm364_vm1 = vcmask (!%p171_p3), 1041408   ;;  %v424_v21 = vshrl.u32 (!%p171_p3), %v423_v20, 7 }
   0xc   : > { %370 = vmatprep.subr.bf16.mxu0 (!%p171_p3), %v707_v1  ;;  %581 = vmatprep.subr.bf16.mxu1 (!%p171_p3), %v707_v1  ;;  %v656_v12 = vld [vmem:[%s866_s1 + $0x40] sm:$0xff] (!%p171_p3)   ;;  %v657_v13 = vld [vmem:[%s866_s1 + $0x48] sm:$0xff] (!%p171_p3)   ;;  %v658_v14 = vld [vmem:[%s866_s1 + $0x50] sm:$0xff] (!%p171_p3)  }
   0xd   : > { %v659_v15 = vld [vmem:[%s866_s1 + $0x58] sm:$0xff] (!%p171_p3)   ;;  %v660_v16 = vld [vmem:[%s866_s1 + $0x60] ss:$0 sps:$4 sm:$0x33] (!%p171_p3)   ;;  %v426_v22 = vadd.s32 (!%p171_p3), 16, %v424_v21  ;;  %v425_v23 = vadd.s32 (!%p171_p3), 8, %v424_v21 }
   0xe   : > { %v366_v17 = vsel (!%p171_p3), %vm364_vm1, %v660_v16, 0  ;;  %v557_v25 = vld [vmem:[%s867_s2] ss:$0 sm:$0xff] (!%p171_p3)  ;;  %v427_v31 = vadd.s32 (!%p171_p3), 24, %v424_v21 }
   0xf   : > { %371 = vmatpush1.bf16.msra.mxu0 (!%p171_p3), %v649_v2  ;;  %594 = vmatpush1.bf16.msra.mxu1 (!%p171_p3), %v649_v2 }
  0x10   : > { %s880_s13 = smov (!%p204_p5, %s693_s13), 1  ;;  %s882_s23 = smov (!%p206_p6, %s552_s23), 7  ;;  %372 = vmatprep.subr.bf16.mxu0 %v707_v1  ;;  %582 = vmatprep.subr.bf16.mxu1 %v707_v1 }
  0x11   : > { %s554_s26 = sshll.u32 %s880_s13, 4  ;;  %s553_s27 = sshll.u32 %s882_s23, 1 }
  0x12   : > { %s210_s28 = sadd.s32 %s554_s26, %s553_s27  ;;  %s556_s8 = sshll.u32 %s880_s13, 1 }
  0x13   : > { %373 = vmatpush1.bf16.msra.mxu0 %v650_v3  ;;  %595 = vmatpush1.bf16.msra.mxu1 %v650_v3  ;;  %s555_s4 = sshll.u32 %s210_s28, 2 }
  0x14   : > { %374 = vmatprep.subr.bf16.mxu0 %v707_v1  ;;  %583 = vmatprep.subr.bf16.mxu1 %v707_v1  ;;  %s786_s7 = scalar_lea.vmem %s865_s0, %s555_s4 }
  0x15   : > { %s218_s9 = scalar_select %p217_p7, %s689_s12, 1  ;;  %v663_v6 = vld [vmem:[%s786_s7 + $0x4] ss:$8 sps:$4 sm:$0xff]   ;;  %v666_v7 = vld [vmem:[%s786_s7 + $0x14] ss:$8 sps:$4 sm:$0xff]  }
  0x16   : > { %575 = vmatprep.mubr.msk.bf16.mxu0 %vm357_vm0, %v663_v6  ;;  %576 = vmatprep.mubr.msk.bf16.mxu1 %vm357_vm0, %v666_v7  ;;  %v661_v18 = vld [vmem:[%s786_s7] ss:$8 sps:$4 sm:$0xff]   ;;  %v664_v19 = vld [vmem:[%s786_s7 + $0x10] ss:$8 sps:$4 sm:$0xff]  }
  0x17   : > { %375 = vmatpush1.bf16.msra.mxu0 %v651_v4  ;;  %596 = vmatpush1.bf16.msra.mxu1 %v651_v4  ;;  %s220_s19 = sadd.s32 %s556_s8, %s218_s9 }
  0x18   : > { %376 = vmatprep.subr.bf16.mxu0 %v707_v1  ;;  %584 = vmatprep.subr.bf16.mxu1 %v707_v1  ;;  %s798_s22 = scalar_lea.vmem %s868_s3, %s220_s19  ;;  %s577_s19 = sshll.u32 %s689_s12, 5 }
  0x19   : > { %227 = vst [vmem:[%s798_s22] sm:$0x1] %v708_v8  ;;  %v428_v24 = vstv %s577_s19 }
  0x1a   : > { %v429_v27 = vadd.s32 %v428_v24, %v424_v21  ;;  %v431_v29 = vadd.s32 %v428_v24, %v426_v22  ;;  %v430_v30 = vadd.s32 %v428_v24, %v425_v23  ;;  %v432_v44 = vadd.s32 %v428_v24, %v427_v31 }
  0x1b   : > { %377 = vmatpush1.bf16.msra.mxu0 %v652_v5  ;;  %597 = vmatpush1.bf16.msra.mxu1 %v652_v5 }
  0x1c   : > { %378 = vmatprep.subr.bf16.mxu0 %v707_v1  ;;  %585 = vmatprep.subr.bf16.mxu1 %v707_v1  ;;  %vm433_vm2 = vcmp.lt.s32.totalorder %v429_v27, 64  ;;  %vm435_vm3 = vcmp.lt.s32.totalorder %v431_v29, 64  ;;  %vm434_vm4 = vcmp.lt.s32.totalorder %v430_v30, 64  ;;  %vm436_vm5 = vcmp.lt.s32.totalorder %v432_v44, 64 }
  0x1f   : > { %379 = vmatpush1.bf16.msra.mxu0 %v653_v9  ;;  %598 = vmatpush1.bf16.msra.mxu1 %v653_v9 }
  0x20   : > { %380 = vmatprep.subr.bf16.mxu0 %v707_v1  ;;  %586 = vmatprep.subr.bf16.mxu1 %v707_v1  ;;  %v449_v59 = vld [vmem:[%s798_s22] sm:$0x1] }
  0x23   : > { %381 = vmatpush1.bf16.msra.mxu0 %v654_v10  ;;  %599 = vmatpush1.bf16.msra.mxu1 %v654_v10 }
  0x24   : > { %382 = vmatprep.subr.bf16.mxu0 %v707_v1  ;;  %587 = vmatprep.subr.bf16.mxu1 %v707_v1 }
  0x27   : > { %383 = vmatpush1.bf16.msra.mxu0 %v655_v11  ;;  %600 = vmatpush1.bf16.msra.mxu1 %v655_v11 }
  0x28   : > { %384 = vmatprep.subr.bf16.mxu0 %v707_v1  ;;  %588 = vmatprep.subr.bf16.mxu1 %v707_v1 }
  0x2b   : > { %385 = vmatpush1.bf16.msra.mxu0 %v656_v12  ;;  %601 = vmatpush1.bf16.msra.mxu1 %v656_v12 }
  0x2c   : > { %386 = vmatprep.subr.bf16.mxu0 %v707_v1  ;;  %589 = vmatprep.subr.bf16.mxu1 %v707_v1 }
  0x2f   : > { %387 = vmatpush1.bf16.msra.mxu0 %v657_v13  ;;  %602 = vmatpush1.bf16.msra.mxu1 %v657_v13 }
  0x30   : > { %388 = vmatprep.subr.bf16.mxu0 %v707_v1  ;;  %590 = vmatprep.subr.bf16.mxu1 %v707_v1 }
  0x33   : > { %389 = vmatpush1.bf16.msra.mxu0 %v658_v14  ;;  %603 = vmatpush1.bf16.msra.mxu1 %v658_v14 }
  0x34   : > { %390 = vmatprep.subr.bf16.mxu0 %v707_v1  ;;  %591 = vmatprep.subr.bf16.mxu1 %v707_v1 }
  0x37   : > { %391 = vmatpush1.bf16.msra.mxu0 %v659_v15  ;;  %604 = vmatpush1.bf16.msra.mxu1 %v659_v15 }
  0x38   : > { %392 = vmatprep.subr.bf16.mxu0 %v707_v1  ;;  %592 = vmatprep.subr.bf16.mxu1 %v707_v1 }
  0x3b   : > { %393 = vmatpush1.bf16.msra.mxu0 %v366_v17  ;;  %605 = vmatpush1.bf16.msra.mxu1 %v366_v17 }
  0x3e   : > { %401 = vmatmul.mubr.bf16.vlgmr.msra.gmra.mrb[0].mxu0 %v661_v18  ;;  %409 = vmatmul.mubr.bf16.vlgmr.msra.gmra.mrb[0].mxu1 %v664_v19 }
 0x111   : > { %v402_v26 = vpop.f32.mrb[0].mxu0  ;;  %v410_v28 = vpop.f32.mrb[0].mxu1 }
 0x112   : > { %v403_v32 = vadd.f32 %v557_v25, %v402_v26  ;;  %v404_v33 = vpop.f32.mrb[1].mxu0  ;;  %v411_v34 = vadd.f32 %v557_v25, %v410_v28  ;;  %v412_v35 = vpop.f32.mrb[1].mxu1 }
 0x113   : > { %v405_v36 = vpop.f32.mrb[2].mxu0  ;;  %v413_v37 = vpop.f32.mrb[2].mxu1 }
 0x114   : > { %v417_v38 = vmax.f32 %v403_v32, 0.0  ;;  %v419_v39 = vmax.f32 %v411_v34, 0.0  ;;  %v406_v40 = vadd.f32 %v557_v25, %v405_v36  ;;  %v407_v41 = vpop.f32.mrb[3].mxu0  ;;  %v414_v42 = vadd.f32 %v557_v25, %v413_v37  ;;  %v415_v43 = vpop.f32.mrb[3].mxu1 }
 0x116   : > { %v418_v45 = vmax.f32 %v406_v40, 0.0  ;;  %v445_v46 = vsel %vm433_vm2, %v417_v38, 0.0  ;;  %v447_v47 = vsel %vm435_vm3, %v419_v39, 0.0  ;;  %v420_v49 = vmax.f32 %v414_v42, 0.0 }
 0x118   : > { %v446_v48 = vsel %vm434_vm4, %v418_v45, 0.0  ;;  %v448_v52 = vsel %vm436_vm5, %v420_v49, 0.0 }
 0x119   : > { %v450_v50 = vadd.f32 %v446_v48, %v445_v46 }
 0x11b   : > { %v451_v51 = vadd.f32 %v450_v50, %v447_v47 }
 0x11d   : > { %v452_v53 = vadd.f32 %v451_v51, %v448_v52 }
 0x11f   : > { %v453_v54 = vrot.slane %v452_v53, 4 }
 0x121   : > { %v454_v55 = vadd.f32 %v453_v54, %v452_v53 }
 0x123   : > { %v455_v56 = vrot.slane %v454_v55, 2 }
 0x125   : > { %v456_v57 = vadd.f32 %v455_v56, %v454_v55 }
 0x127   : > { %v457_v58 = vrot.slane %v456_v57, 1 }
 0x129   : > { %v458_v60 = vadd.f32 %v457_v58, %v456_v57 }
 0x12b   : > { %v459_v61 = vadd.f32 %v458_v60, %v449_v59 }
 0x12d   : > { %460 = vst [vmem:[%s798_s22] sm:$0x1] %v459_v61 }
 0x12e PF: > { %s13_s16 = sadd.s32 1, %s705_s16   ;;  %s869_s12 = smov %s697_s14 }
 0x12f   : > { %p10_p8 = scmp.ge.s32.totalorder %s13_s16, 6   ;;  %s870_s13 = smov %s701_s15 }
 0x130   : > { %s871_s14 = smov %s874_s17  ;;  %s872_s15 = smov %s878_s18 }
 0x131   :  { %12 = sbr.rel (!%p10_p8) target bundleno = 3 (0x3), region = 66 }

</bundles_post_ra>
